<compile_context>
chip_gen: v7x
topology: tpu7x:2x2x1
jax: 0.10.0
libtpu: 0.0.40
codegen_flags: <defaults>
</compile_context>

<pallas_src>
import functools

import jax
import jax.numpy as jnp
from jax.experimental import pallas as pl
from jax.experimental.pallas import tpu as pltpu


def _round_up(n, m):
    return ((n + m - 1) // m) * m


def _policy_kernel(x_ref, w1_ref, b1_ref, w2_ref, b2_ref, w3_ref, b3_ref,
                   loc_ref):
    # Hidden layer 1: Linear + ReLU (MXU matmul; bias add / ReLU in f32).
    h = jnp.dot(x_ref[...], w1_ref[...], preferred_element_type=jnp.float32)
    h = jnp.maximum(h + b1_ref[...], 0.0)

    # Hidden layer 2 (n_layers == 1): Linear + ReLU.
    h = jnp.dot(h.astype(w2_ref.dtype), w2_ref[...],
                preferred_element_type=jnp.float32)
    h = jnp.maximum(h + b2_ref[...], 0.0)

    # Output head: Linear -> loc.
    loc = jnp.dot(h.astype(w3_ref.dtype), w3_ref[...],
                  preferred_element_type=jnp.float32) + b3_ref[...]
    loc_ref[...] = loc.astype(loc_ref.dtype)


def prepare_params(params, compute_dtype=jnp.float32):
    """One-time pad/cast of the parameters (outside the per-call forward).

    The hidden dim is zero-padded to a multiple of 128 (lane-dense; exact
    because ReLU(0)=0 and zero rows/cols contribute nothing).  Weights are
    stored in compute_dtype (bf16 halves weight DMA and runs the MXU at its
    native bf16 rate); biases stay f32 since bias add / ReLU are f32.
    """
    w1, b1, w2, b2, w3, b3, logstd = params
    n_features = w1.shape[0]
    n_hidden = w1.shape[1]
    n_actions = w3.shape[1]
    # NOTE: if the hidden size ever grows to >=256, round to 256 on v6e/v7x
    # (2x256^2 MXU) and consider bf16 / K-tiling so W2 fits v7x's 64 MiB VMEM.
    H = _round_up(n_hidden, 128)

    def pad2(a, rows, cols):
        return jnp.pad(a, ((0, rows - a.shape[0]), (0, cols - a.shape[1])))

    w1_p = pad2(w1, n_features, H).astype(compute_dtype)
    w2_p = pad2(w2, H, H).astype(compute_dtype)
    w3_p = pad2(w3, H, n_actions).astype(compute_dtype)
    b1_p = pad2(b1.reshape(1, -1), 1, H).astype(jnp.float32)
    b2_p = pad2(b2.reshape(1, -1), 1, H).astype(jnp.float32)
    b3_p = b3.reshape(1, -1).astype(jnp.float32)
    logstd = logstd.reshape(-1).astype(jnp.float32)
    return (w1_p, b1_p, w2_p, b2_p, w3_p, b3_p, logstd)


@functools.partial(jax.jit, static_argnames=("tile_b",))
def continuous_policy_forward(x, prepared, *, tile_b=2048):
    """x: (B, n_features).  Returns (loc (B, n_actions) f32, scale (n_actions,) f32).

    `prepared` must come from prepare_params().  scale is the compact
    exp(logstd) vector; dist.Normal broadcasts it lazily against loc.
    """
    w1, b1, w2, b2, w3, b3, logstd = prepared
    B, n_features = x.shape
    H = w1.shape[1]
    n_actions = w3.shape[1]

    # Batch tile: sublane-aligned, large to amortize the ~0.35us per-grid-step
    # overhead, capped so large B gives >= 2 steps (v7x 2-TC sharding of the
    # "parallel" axis).  VMEM stays tiny: a 2048-row f32 block is ~128 KiB.
    if B <= 8:
        tile = _round_up(B, 8)
    else:
        tile = max(8, min(tile_b, _round_up(pl.cdiv(B, 2), 8)))
    grid = (pl.cdiv(B, tile),)
    # NOTE: if B % tile != 0 the last block's out-of-range rows read
    # unspecified data; rows are independent and out-of-range output rows are
    # dropped, so valid rows are unaffected.

    x = x.astype(w1.dtype)  # no-op for f32 params; halves x DMA bytes for bf16
    resident = lambda shape: pl.BlockSpec(shape, lambda i: (0, 0))

    loc = pl.pallas_call(
        _policy_kernel,
        out_shape=jax.ShapeDtypeStruct((B, n_actions), jnp.float32),
        grid=grid,
        in_specs=[
            pl.BlockSpec((tile, n_features), lambda i: (i, 0)),  # x, unpadded
            resident((n_features, H)), resident((1, H)),         # w1, b1
            resident((H, H)), resident((1, H)),                  # w2, b2
            resident((H, n_actions)), resident((1, n_actions)),  # w3, b3
        ],
        out_specs=pl.BlockSpec((tile, n_actions), lambda i: (i, 0)),
        compiler_params=pltpu.CompilerParams(
            dimension_semantics=("parallel",)),
    )(x, w1, b1, w2, b2, w3, b3)

    scale = jnp.exp(logstd)  # compact (n_actions,); broadcasting stays lazy
    return loc, scale


def init_params(key, n_features, n_actions, n_intermediate):
    """Deterministic init mimicking nn.Linear's U(-1/sqrt(in), 1/sqrt(in)).

    Weights are stored as (in_features, out_features) — the transpose of
    PyTorch's nn.Linear.weight — so the kernel computes x @ W + b.
    """
    ks = jax.random.split(key, 6)

    def linear(kw, kb, fan_in, fan_out):
        bound = 1.0 / (fan_in ** 0.5)
        w = jax.random.uniform(kw, (fan_in, fan_out), jnp.float32, -bound, bound)
        b = jax.random.uniform(kb, (fan_out,), jnp.float32, -bound, bound)
        return w, b

    w1, b1 = linear(ks[0], ks[1], n_features, n_intermediate)
    w2, b2 = linear(ks[2], ks[3], n_intermediate, n_intermediate)
    w3, b3 = linear(ks[4], ks[5], n_intermediate, n_actions)
    # nn.Parameter(torch.zeros(n_actions) - 0.5)
    logstd = jnp.full((n_actions,), -0.5, dtype=jnp.float32)
    return (w1, b1, w2, b2, w3, b3, logstd)


def reference_forward(x, params):
    w1, b1, w2, b2, w3, b3, logstd = params
    h = jnp.maximum(x @ w1 + b1, 0.0)
    h = jnp.maximum(h @ w2 + b2, 0.0)
    loc = h @ w3 + b3
    scale = jnp.exp(logstd)
    return loc, scale


if __name__ == "__main__":
    # Small shapes consistent with the module.
    B, n_features, n_actions, n_intermediate = 8, 16, 4, 32

    key = jax.random.PRNGKey(0)
    k_x, k_p = jax.random.split(key)
    x = jax.random.normal(k_x, (B, n_features), dtype=jnp.float32)
    params = init_params(k_p, n_features, n_actions, n_intermediate)
    loc_ref, scale_ref = reference_forward(x, params)

    # f32 path: exact check against the reference.
    prepared_f32 = prepare_params(params, jnp.float32)
    loc, scale = continuous_policy_forward(x, prepared_f32)
    jax.block_until_ready((loc, scale))
    assert loc.shape == (B, n_actions) and scale.shape == (n_actions,)
    assert jnp.allclose(loc, loc_ref, atol=1e-5, rtol=1e-5)
    assert jnp.allclose(scale, scale_ref, atol=1e-6, rtol=1e-6)

    # bf16 MXU path (recommended default on v5e/v6e): loose tolerance —
    # expected precision change from bf16 inputs with f32 accumulation.
    prepared_bf16 = prepare_params(params, jnp.bfloat16)
    loc_bf16, _ = continuous_policy_forward(x, prepared_bf16)
    jax.block_until_ready(loc_bf16)
    assert jnp.allclose(loc_bf16, loc_ref, atol=1e-1, rtol=1e-1)

    print("KERNEL_OK")
</pallas_src>

<mosaic_0001>
module attributes {stable_mosaic.version = 11 : i64} {
  func.func @_policy_kernel(%arg0: i32, %arg1: memref<8x16xf32, #tpu.memory_space<vmem>>, %arg2: memref<16x128xf32, #tpu.memory_space<vmem>>, %arg3: memref<1x128xf32, #tpu.memory_space<vmem>>, %arg4: memref<128x128xf32, #tpu.memory_space<vmem>>, %arg5: memref<1x128xf32, #tpu.memory_space<vmem>>, %arg6: memref<128x4xf32, #tpu.memory_space<vmem>>, %arg7: memref<1x4xf32, #tpu.memory_space<vmem>>, %arg8: memref<8x4xf32, #tpu.memory_space<vmem>>) attributes {dimension_semantics = [#tpu.dimension_semantics<parallel>], iteration_bounds = array<i64: 1>, scalar_prefetch = 0 : i64, scratch_operands = 0 : i64, tpu.core_type = #tpu.core_type<tc>, window_params = [{transform_indices = @transform_0, window_bounds = array<i64: 8, 16>}, {pipeline_mode = #tpu.pipeline_mode<synchronous>, transform_indices = @transform_1, window_bounds = array<i64: 16, 128>}, {pipeline_mode = #tpu.pipeline_mode<synchronous>, transform_indices = @transform_2, window_bounds = array<i64: 1, 128>}, {pipeline_mode = #tpu.pipeline_mode<synchronous>, transform_indices = @transform_3, window_bounds = array<i64: 128, 128>}, {pipeline_mode = #tpu.pipeline_mode<synchronous>, transform_indices = @transform_4, window_bounds = array<i64: 1, 128>}, {pipeline_mode = #tpu.pipeline_mode<synchronous>, transform_indices = @transform_5, window_bounds = array<i64: 128, 4>}, {pipeline_mode = #tpu.pipeline_mode<synchronous>, transform_indices = @transform_6, window_bounds = array<i64: 1, 4>}, {transform_indices = @transform_7, window_bounds = array<i64: 8, 4>}]} {
    %c0 = arith.constant 0 : index
    %c0_0 = arith.constant 0 : index
    %0 = vector.load %arg1[%c0, %c0_0] : memref<8x16xf32, #tpu.memory_space<vmem>>, vector<8x16xf32>
    %c0_1 = arith.constant 0 : index
    %c0_2 = arith.constant 0 : index
    %1 = vector.load %arg2[%c0_1, %c0_2] : memref<16x128xf32, #tpu.memory_space<vmem>>, vector<16x128xf32>
    %cst = arith.constant dense<0.000000e+00> : vector<8x128xf32>
    %2 = tpu.matmul %0, %1, %cst {dimension_numbers = #tpu.dot_dimension_numbers<[1], [0], [0], [1], [0, 0, 1, 1], [], []>} : vector<8x16xf32>, vector<16x128xf32>, vector<8x128xf32> -> vector<8x128xf32>
    %c0_3 = arith.constant 0 : index
    %c0_4 = arith.constant 0 : index
    %3 = vector.load %arg3[%c0_3, %c0_4] : memref<1x128xf32, #tpu.memory_space<vmem>>, vector<1x128xf32>
    %4 = vector.broadcast %3 : vector<1x128xf32> to vector<8x128xf32>
    %5 = arith.addf %2, %4 : vector<8x128xf32>
    %cst_5 = arith.constant 0.000000e+00 : f32
    %6 = vector.broadcast %cst_5 : f32 to vector<8x128xf32>
    %7 = arith.maximumf %5, %6 : vector<8x128xf32>
    %c0_6 = arith.constant 0 : index
    %c0_7 = arith.constant 0 : index
    %8 = vector.load %arg4[%c0_6, %c0_7] : memref<128x128xf32, #tpu.memory_space<vmem>>, vector<128x128xf32>
    %cst_8 = arith.constant dense<0.000000e+00> : vector<8x128xf32>
    %9 = tpu.matmul %7, %8, %cst_8 {dimension_numbers = #tpu.dot_dimension_numbers<[1], [0], [0], [1], [0, 0, 1, 1], [], []>} : vector<8x128xf32>, vector<128x128xf32>, vector<8x128xf32> -> vector<8x128xf32>
    %c0_9 = arith.constant 0 : index
    %c0_10 = arith.constant 0 : index
    %10 = vector.load %arg5[%c0_9, %c0_10] : memref<1x128xf32, #tpu.memory_space<vmem>>, vector<1x128xf32>
    %11 = vector.broadcast %10 : vector<1x128xf32> to vector<8x128xf32>
    %12 = arith.addf %9, %11 : vector<8x128xf32>
    %cst_11 = arith.constant 0.000000e+00 : f32
    %13 = vector.broadcast %cst_11 : f32 to vector<8x128xf32>
    %14 = arith.maximumf %12, %13 : vector<8x128xf32>
    %c0_12 = arith.constant 0 : index
    %c0_13 = arith.constant 0 : index
    %15 = vector.load %arg6[%c0_12, %c0_13] : memref<128x4xf32, #tpu.memory_space<vmem>>, vector<128x4xf32>
    %cst_14 = arith.constant dense<0.000000e+00> : vector<8x4xf32>
    %16 = tpu.matmul %14, %15, %cst_14 {dimension_numbers = #tpu.dot_dimension_numbers<[1], [0], [0], [1], [0, 0, 1, 1], [], []>} : vector<8x128xf32>, vector<128x4xf32>, vector<8x4xf32> -> vector<8x4xf32>
    %c0_15 = arith.constant 0 : index
    %c0_16 = arith.constant 0 : index
    %17 = vector.load %arg7[%c0_15, %c0_16] : memref<1x4xf32, #tpu.memory_space<vmem>>, vector<1x4xf32>
    %18 = vector.broadcast %17 : vector<1x4xf32> to vector<8x4xf32>
    %19 = arith.addf %16, %18 : vector<8x4xf32>
    %c0_17 = arith.constant 0 : index
    %c0_18 = arith.constant 0 : index
    %20 = vector.load %arg8[%c0_17, %c0_18] : memref<8x4xf32, #tpu.memory_space<vmem>>, vector<8x4xf32>
    tpu.vector_store %arg8[%c0_17, %c0_18], %19 {strides = array<i32>} : memref<8x4xf32, #tpu.memory_space<vmem>>, vector<8x4xf32>,
    return
  }
  func.func @transform_0(%arg0: i32) -> (i32, i32) {
    %c0_i32 = arith.constant 0 : i32
    %c0_i32_0 = arith.constant 0 : i32
    return %arg0, %c0_i32 : i32, i32
  }
  func.func @transform_1(%arg0: i32) -> (i32, i32) {
    %c0_i32 = arith.constant 0 : i32
    %c0_i32_0 = arith.constant 0 : i32
    %c0_i32_1 = arith.constant 0 : i32
    return %c0_i32, %c0_i32_0 : i32, i32
  }
  func.func @transform_2(%arg0: i32) -> (i32, i32) {
    %c0_i32 = arith.constant 0 : i32
    %c0_i32_0 = arith.constant 0 : i32
    %c0_i32_1 = arith.constant 0 : i32
    return %c0_i32, %c0_i32_0 : i32, i32
  }
  func.func @transform_3(%arg0: i32) -> (i32, i32) {
    %c0_i32 = arith.constant 0 : i32
    %c0_i32_0 = arith.constant 0 : i32
    %c0_i32_1 = arith.constant 0 : i32
    return %c0_i32, %c0_i32_0 : i32, i32
  }
  func.func @transform_4(%arg0: i32) -> (i32, i32) {
    %c0_i32 = arith.constant 0 : i32
    %c0_i32_0 = arith.constant 0 : i32
    %c0_i32_1 = arith.constant 0 : i32
    return %c0_i32, %c0_i32_0 : i32, i32
  }
  func.func @transform_5(%arg0: i32) -> (i32, i32) {
    %c0_i32 = arith.constant 0 : i32
    %c0_i32_0 = arith.constant 0 : i32
    %c0_i32_1 = arith.constant 0 : i32
    return %c0_i32, %c0_i32_0 : i32, i32
  }
  func.func @transform_6(%arg0: i32) -> (i32, i32) {
    %c0_i32 = arith.constant 0 : i32
    %c0_i32_0 = arith.constant 0 : i32
    %c0_i32_1 = arith.constant 0 : i32
    return %c0_i32, %c0_i32_0 : i32, i32
  }
  func.func @transform_7(%arg0: i32) -> (i32, i32) {
    %c0_i32 = arith.constant 0 : i32
    %c0_i32_0 = arith.constant 0 : i32
    return %arg0, %c0_i32 : i32, i32
  }
}

</mosaic_0001>

<bundles_post_ra>
// kernel: continuous_policy_forward.1
= control target key start
LH: loop header
LB: loop body
LE: loop exit
PB: predicated region body
PF: predicated region fallthrough
CT: control target
= control target key end

     0   :  { %12 = vsyncpa [#allocation3], 0  ;;  %s752_s0 = inlined_call_operand.hbm [shape: f32[8,16], index: 0, kind: input, shape index: {}]   ;;  %s753_s1 = inlined_call_operand.vmem [shape: f32[16,128], index: 1, kind: input, shape index: {}]   ;;  %s754_s2 = inlined_call_operand.vmem [shape: f32[1,128], index: 2, kind: input, shape index: {}]   ;;  %s755_s3 = inlined_call_operand.vmem [shape: f32[128,128], index: 3, kind: input, shape index: {}]   ;;  %s756_s4 = inlined_call_operand.vmem [shape: f32[1,128], index: 4, kind: input, shape index: {}]   ;;  %s757_s5 = inlined_call_operand.vmem [shape: f32[128,4], index: 5, kind: input, shape index: {}]   ;;  %s758_s6 = inlined_call_operand.hbm [shape: f32[1,4], index: 6, kind: input, shape index: {}]   ;;  %s759_s7 = inlined_call_operand.vmem [shape: f32[8,4], index: 7, kind: output, shape index: {}]  }
   0x1   :  { %13 = vsyncpa [#allocation5], 0  ;;  %s552_s24 = smov [#allocation2]   ;;  %s553_s26 = smov [#allocation4]  }
   0x2   :  { %s20_s25 = sshll.u32 %s552_s24, 4  ;;  %s40_s27 = sshll.u32 %s553_s26, 4  ;;  %s21_s25 = int_to_ptr.vmem [resolvable:$true] %s20_s25  ;;  %s41_s27 = int_to_ptr.vmem [resolvable:$true] %s40_s27 }
   0x3   :  { %s504_s30 = scalar_lea.hbm %s752_s0, 128 }
   0x4   :  { %p505_p0 = scmp.ne.s32.totalorder %s752_s0, %s504_s30  ;;  %p508_p1 = scmp.lt.u32.totalorder %s504_s30, %s752_s0 }
   0x6   :  { %p510_p2 = pnand %p508_p1, %p505_p0 }
   0x8   :  { %513 = shalt.err (!%p510_p2)
}
   0x9   :  { %s514_s12 = scalar_lea.vmem %s21_s25, 128  ;;  %p519_p4 = scmp.lt.s32.totalorder %s21_s25, %s21_s25 }
   0xa   :  { %p515_p3 = scmp.ne.s32.totalorder %s21_s25, %s514_s12  ;;  %p520_p5 = scmp.lt.s32.totalorder %s514_s12, %s514_s12 }
   0xc   :  { %p521_p6 = por %p520_p5, %p519_p4 }
   0xe   :  { %p522_p7 = pnand %p521_p6, %p515_p3 }
  0x10   :  { %525 = shalt.err (!%p522_p7)
}
  0x11   :  { %23 = dma.hbm_to_vmem [thread:$0]  %s752_s0, 128, %s21_s25, [#allocation3]  }
  0x12   :  { %s526_s17 = scalar_lea.hbm %s758_s6, 16 }
  0x13   :  { %p527_p8 = scmp.ne.s32.totalorder %s758_s6, %s526_s17  ;;  %p530_p9 = scmp.lt.u32.totalorder %s526_s17, %s758_s6 }
  0x15   :  { %p532_p10 = pnand %p530_p9, %p527_p8 }
  0x17   :  { %535 = shalt.err (!%p532_p10)
}
  0x18   :  { %s536_s22 = scalar_lea.vmem %s41_s27, 16  ;;  %s540_s23 = scalar_lea.vmem %s41_s27, 32 }
  0x19   :  { %p537_p11 = scmp.ne.s32.totalorder %s41_s27, %s536_s22  ;;  %p541_p12 = scmp.lt.s32.totalorder %s41_s27, %s41_s27 }
  0x1a   :  { %p542_p13 = scmp.lt.s32.totalorder %s540_s23, %s536_s22 }
  0x1c   :  { %p543_p0 = por %p542_p13, %p541_p12 }
  0x1e   :  { %p544_p1 = pnand %p543_p0, %p537_p11 }
  0x20   :  { %547 = shalt.err (!%p544_p1)
}
  0x21   :  { %43 = dma.hbm_to_vmem [thread:$0]  %s758_s6, 16, %s41_s27, [#allocation5]  }
  0x22   :  { %548 = dma.done.wait [#allocation3], 128  }
  0x23   :  { %549 = vsyncadd [#allocation3], 4294967168 }
  0x24   :  { %550 = dma.done.wait [#allocation5], 16  }
  0x25   :  { %551 = vsyncadd [#allocation5], 4294967280  ;;  %v554_v0 = vmov 0.0|0.0   ;;  %vm555_vm0 = vmmov 0   ;;  %v556_v1 = vmov 0.0   ;;  %v51_v2 = vld [vmem:[%s753_s1] sm:$0xff] }
  0x26   :  { %448 = vmatprep.subr.bf16.mxu0 %v554_v0  ;;  %375 = vmatprep.mubr.msk.f32.mxu0 %vm555_vm0, %v556_v1  ;;  %v52_v3 = vld [vmem:[%s753_s1 + $0x8] sm:$0xff]  ;;  %v135_v5 = vld [vmem:[%s755_s3] sm:$0xff]  ;;  %v137_v7 = vld [vmem:[%s755_s3 + $0x10] sm:$0xff]  ;;  %vm60_vm1 = vcmask 130048   ;;  %vm322_vm2 = vcmask 31744  }
  0x27   :  { %451 = vmatprep.subr.bf16.mxu1 %v554_v0  ;;  %410 = vmatprep.mubr.msk.f32.mxu1 %vm555_vm0, %v556_v1  ;;  %v449_v4 = vpack.c.bf16 %v52_v3, %v51_v2  ;;  %v136_v6 = vld [vmem:[%s755_s3 + $0x8] sm:$0xff]  ;;  %v138_v9 = vld [vmem:[%s755_s3 + $0x18] sm:$0xff]  ;;  %v50_v10 = vld [vmem:[#allocation2] sm:$0xff] }
  0x28   :  { %v452_v8 = vpack.c.bf16 %v136_v6, %v135_v5  ;;  %v455_v11 = vpack.c.bf16 %v138_v9, %v137_v7  ;;  %v139_v12 = vld [vmem:[%s755_s3 + $0x20] sm:$0xff]  ;;  %v140_v13 = vld [vmem:[%s755_s3 + $0x28] sm:$0xff]  ;;  %v141_v15 = vld [vmem:[%s755_s3 + $0x30] sm:$0xff] }
  0x29   :  { %450 = vmatpush3.bf16.msra.mxu0 %v449_v4  ;;  %v458_v14 = vpack.c.bf16 %v140_v13, %v139_v12  ;;  %v142_v16 = vld [vmem:[%s755_s3 + $0x38] sm:$0xff]  ;;  %v143_v18 = vld [vmem:[%s755_s3 + $0x40] sm:$0xff]  ;;  %v144_v19 = vld [vmem:[%s755_s3 + $0x48] sm:$0xff] }
  0x2a   :  { %453 = vmatpush3.bf16.msra.mxu1 %v452_v8  ;;  %475 = vmatprep.subr.bf16.mxu0 %v554_v0  ;;  %v461_v17 = vpack.c.bf16 %v142_v16, %v141_v15  ;;  %v464_v20 = vpack.c.bf16 %v144_v19, %v143_v18  ;;  %v145_v21 = vld [vmem:[%s755_s3 + $0x50] sm:$0xff]  ;;  %v146_v22 = vld [vmem:[%s755_s3 + $0x58] sm:$0xff]  ;;  %v147_v24 = vld [vmem:[%s755_s3 + $0x60] sm:$0xff] }
  0x2b   :  { %454 = vmatprep.subr.bf16.mxu1 %v554_v0  ;;  %v467_v23 = vpack.c.bf16 %v146_v22, %v145_v21  ;;  %v148_v25 = vld [vmem:[%s755_s3 + $0x68] sm:$0xff]  ;;  %v149_v27 = vld [vmem:[%s755_s3 + $0x70] sm:$0xff]  ;;  %v150_v28 = vld [vmem:[%s755_s3 + $0x78] sm:$0xff] }
  0x2c   :  { %376 = vmatmul.mubr.msk.f32.vlgmr.msra.gmra.mrb[0].mxu0 %vm60_vm1, %v50_v10  ;;  %v470_v26 = vpack.c.bf16 %v148_v25, %v147_v24  ;;  %v473_v29 = vpack.c.bf16 %v150_v28, %v149_v27  ;;  %v229_v30 = vld [vmem:[%s757_s5] sm:$0xff]  ;;  %v230_v31 = vld [vmem:[%s757_s5 + $0x8] sm:$0xff]  ;;  %v231_v32 = vld [vmem:[%s757_s5 + $0x10] sm:$0xff] }
  0x2d   :  { %445 = vmatprep.mubr.msk.f32.mxu0 %vm555_vm0, %v556_v1  ;;  %v476_v33 = vpack.c.bf16 %v230_v31, %v229_v30  ;;  %v232_v34 = vld [vmem:[%s757_s5 + $0x18] sm:$0xff]  ;;  %v233_v36 = vld [vmem:[%s757_s5 + $0x20] sm:$0xff]  ;;  %v234_v37 = vld [vmem:[%s757_s5 + $0x28] sm:$0xff] }
  0x2e   :  { %456 = vmatpush3.bf16.msra.mxu1 %v455_v11  ;;  %v479_v35 = vpack.c.bf16 %v232_v34, %v231_v32  ;;  %v482_v38 = vpack.c.bf16 %v234_v37, %v233_v36  ;;  %v235_v39 = vld [vmem:[%s757_s5 + $0x30] sm:$0xff]  ;;  %v236_v40 = vld [vmem:[%s757_s5 + $0x38] sm:$0xff]  ;;  %v237_v42 = vld [vmem:[%s757_s5 + $0x40] sm:$0xff] }
  0x2f   :  { %457 = vmatprep.subr.bf16.mxu1 %v554_v0  ;;  %477 = vmatpush3.bf16.msra.mxu0 %v476_v33  ;;  %v485_v41 = vpack.c.bf16 %v236_v40, %v235_v39  ;;  %v238_v43 = vld [vmem:[%s757_s5 + $0x48] sm:$0xff]  ;;  %v239_v45 = vld [vmem:[%s757_s5 + $0x50] sm:$0xff]  ;;  %v240_v46 = vld [vmem:[%s757_s5 + $0x58] sm:$0xff] }
  0x30   :  { %478 = vmatprep.subr.bf16.mxu0 %v554_v0  ;;  %v488_v44 = vpack.c.bf16 %v238_v43, %v237_v42  ;;  %v491_v47 = vpack.c.bf16 %v240_v46, %v239_v45  ;;  %v241_v48 = vld [vmem:[%s757_s5 + $0x60] sm:$0xff]  ;;  %v242_v49 = vld [vmem:[%s757_s5 + $0x68] sm:$0xff]  ;;  %v243_v56 = vld [vmem:[%s757_s5 + $0x70] sm:$0xff] }
  0x31   :  { %v494_v50 = vpack.c.bf16 %v242_v49, %v241_v48  ;;  %v330_v51 = vld [vmem:[%s754_s2] ss:$0 sm:$0xff]  ;;  %v244_v57 = vld [vmem:[%s757_s5 + $0x78] sm:$0xff] }
  0x32   :  { %459 = vmatpush3.bf16.msra.mxu1 %v458_v14  ;;  %v497_v58 = vpack.c.bf16 %v244_v57, %v243_v56  ;;  %v332_v59 = vld [vmem:[%s756_s4] ss:$0 sm:$0xff] }
  0x33   :  { %460 = vmatprep.subr.bf16.mxu1 %v554_v0  ;;  %480 = vmatpush3.bf16.msra.mxu0 %v479_v35 }
  0x34   :  { %481 = vmatprep.subr.bf16.mxu0 %v554_v0 }
  0x36   :  { %462 = vmatpush3.bf16.msra.mxu1 %v461_v17 }
  0x37   :  { %463 = vmatprep.subr.bf16.mxu1 %v554_v0  ;;  %483 = vmatpush3.bf16.msra.mxu0 %v482_v38 }
  0x38   :  { %484 = vmatprep.subr.bf16.mxu0 %v554_v0 }
  0x3a   :  { %465 = vmatpush3.bf16.msra.mxu1 %v464_v20 }
  0x3b   :  { %466 = vmatprep.subr.bf16.mxu1 %v554_v0  ;;  %486 = vmatpush3.bf16.msra.mxu0 %v485_v41 }
  0x3c   :  { %487 = vmatprep.subr.bf16.mxu0 %v554_v0 }
  0x3e   :  { %468 = vmatpush3.bf16.msra.mxu1 %v467_v23 }
  0x3f   :  { %469 = vmatprep.subr.bf16.mxu1 %v554_v0  ;;  %489 = vmatpush3.bf16.msra.mxu0 %v488_v44 }
  0x40   :  { %490 = vmatprep.subr.bf16.mxu0 %v554_v0 }
  0x42   :  { %471 = vmatpush3.bf16.msra.mxu1 %v470_v26 }
  0x43   :  { %472 = vmatprep.subr.bf16.mxu1 %v554_v0  ;;  %492 = vmatpush3.bf16.msra.mxu0 %v491_v47 }
  0x44   :  { %493 = vmatprep.subr.bf16.mxu0 %v554_v0 }
  0x46   :  { %474 = vmatpush3.bf16.msra.mxu1 %v473_v29 }
  0x47   :  { %495 = vmatpush3.bf16.msra.mxu0 %v494_v50 }
  0x48   :  { %496 = vmatprep.subr.bf16.mxu0 %v554_v0  ;;  %v333_v0 = vld [vmem:[#allocation4] ss:$0 sm:$0xff] }
  0x4b   :  { %498 = vmatpush3.bf16.msra.mxu0 %v497_v58 }
  0xff   :  { %v130_v52 = vpop.f32.mrb[0].mxu0 }
 0x100   :  { %v131_v53 = vadd.f32 %v330_v51, %v130_v52  ;;  %v377_v54 = vpop.f32.mrb[1].mxu0 }
 0x102   :  { %v134_v55 = vmax.f32 %v131_v53, 0.0 }
 0x104   :  { %411 = vmatmul.mubr.f32.vlgmr.msra.gmra.mrb[0].mxu1 %v134_v55 }
 0x1d7   :  { %v224_v60 = vpop.f32.mrb[0].mxu1 }
 0x1d8   :  { %v225_v61 = vadd.f32 %v332_v59, %v224_v60  ;;  %v412_v62 = vpop.f32.mrb[1].mxu1 }
 0x1da   :  { %v228_v63 = vmax.f32 %v225_v61, 0.0 }
 0x1dc   :  { %446 = vmatmul.mubr.f32.vlgmr.msra.gmra.mrb[2].mxu0 %v228_v63 }
 0x2af   :  { %v318_v1 = vpop.f32.mrb[2].mxu0 }
 0x2b0   :  { %v319_v2 = vadd.f32 %v333_v0, %v318_v1  ;;  %v447_v3 = vpop.f32.mrb[3].mxu0 }
 0x2b2   :  { %323 = vst.msk [vmem:[%s759_s7] sm:$0xff] %vm322_vm2, %v319_v2 }
 0x2b3   :  { %328 = vsyncpa [#allocation3], 1 }
 0x2b4   :  { %329 = vsyncpa [#allocation5], 1 }

</bundles_post_ra>
